<compile_context>
chip_gen: v7x
topology: tpu7x:2x2x1
jax: 0.10.0
libtpu: 0.0.40
codegen_flags: <defaults>
</compile_context>

<pallas_src>
import jax
import jax.numpy as jnp
from jax.experimental import pallas as pl
from jax.experimental.pallas import tpu as pltpu


def _salhead_kernel(x_ref, w_ref, b_ref, o_ref):
    # x_ref: (Bn, C, T_HW)  VMEM   pixel tile for Bn images
    # w_ref: (1, C, 1)      VMEM   f32 conv weight (resident)
    # b_ref: (1, 1)         SMEM   f32 conv bias (scalar)
    # o_ref: (Bn, 1, T_HW)  VMEM   output tile (lane-dense along pixels)
    x = x_ref[...].astype(jnp.float32)
    w = w_ref[...]                                   # (1, C, 1), broadcasts
    out = jnp.sum(x * w, axis=1, keepdims=True)      # VPU mul + sublane reduce
    o_ref[...] = (out + b_ref[0, 0]).astype(o_ref.dtype)


def _choose_blocks(N, C, HW, itemsize, max_block_lanes=None):
    """Pick (Bn, T_HW, vmem_limit_bytes) so one pipelined block is MiB-scale
    but the double-buffered working set fits every generation's VMEM."""
    sublane_pack = 8 * max(1, 4 // itemsize)            # 8 f32, 16 bf16, 32 i8
    c_pad = pl.cdiv(C, sublane_pack) * sublane_pack     # padded channel rows

    try:
        vmem_cap = int(pltpu.get_tpu_info().vmem_capacity_bytes)
    except Exception:
        vmem_cap = 64 * 1024 * 1024                     # conservative (v7x)

    # Total VMEM we are willing to spend on pipelined buffers + f32 temp.
    total_budget = min(40 * 1024 * 1024, vmem_cap // 2)

    # VMEM bytes per pixel lane:
    #   2x double-buffered x rows, 2x output rows (1 row padded to a sublane
    #   tile), and the f32 multiply temporary.
    per_lane = (2 * c_pad * itemsize
                + 2 * sublane_pack * itemsize
                + c_pad * 4)
    max_lanes = max(128, (total_budget // per_lane) // 128 * 128)
    if max_block_lanes is not None:
        max_lanes = max(128, min(max_lanes, (max_block_lanes // 128) * 128))

    hw_lanes = pl.cdiv(HW, 128) * 128                   # lanes one image needs
    if hw_lanes >= max_lanes:
        # Tile the pixel axis; one image per step (T_HW is a multiple of 128).
        bn = 1
        t_hw = min(max_lanes, hw_lanes)
    else:
        # Whole image per step; batch images up to the byte target.
        t_hw = HW
        bn = max(1, min(N, max_lanes // hw_lanes))

    # Keep enough grid steps for megacore / pipelining.
    def _steps(b, t):
        return pl.cdiv(N, b) * pl.cdiv(HW, t)

    while _steps(bn, t_hw) < 4:
        if bn > 1:
            bn = pl.cdiv(bn, 2)
        elif t_hw > 256:
            t_hw = max(128, ((t_hw // 2) // 128) * 128)
        else:
            break

    lanes_used = bn * (pl.cdiv(t_hw, 128) * 128)
    w_vmem = c_pad * 128 * 4                            # resident f32 weight
    needed = lanes_used * per_lane + w_vmem + (2 << 20)
    vmem_limit = int(min(max(needed, 32 * 1024 * 1024), vmem_cap))
    return bn, t_hw, vmem_limit


def salhead_forward(x_nchw, weight, bias, *, max_block_lanes=None):
    """SalHead forward (eval mode): identity dropout + 1x1 conv to 1 channel.

    x_nchw: (N, C, H, W)
    weight: (1, C), (C,), or PyTorch-style (1, C, 1, 1)
    bias:   scalar, (1,), or (1, 1)
    Returns (N, 1, H, W) in x's dtype.
    """
    N, C, H, W = x_nchw.shape
    HW = H * W
    itemsize = jnp.dtype(x_nchw.dtype).itemsize

    w = jnp.asarray(weight).reshape(1, C, 1).astype(jnp.float32)
    b = jnp.asarray(bias).reshape(1, 1).astype(jnp.float32)

    bn, t_hw, vmem_limit = _choose_blocks(N, C, HW, itemsize, max_block_lanes)

    x = x_nchw.reshape(N, C, HW)                        # free: same layout

    cost = pl.CostEstimate(
        flops=2 * N * C * HW,
        transcendentals=0,
        bytes_accessed=(N * C * HW * itemsize           # x read stream
                        + N * HW * itemsize             # output write stream
                        + C * 4                         # weight
                        + 4),                           # bias
    )

    out = pl.pallas_call(
        _salhead_kernel,
        out_shape=jax.ShapeDtypeStruct((N, 1, HW), x_nchw.dtype),
        grid_spec=pltpu.PrefetchScalarGridSpec(
            num_scalar_prefetch=0,
            grid=(pl.cdiv(N, bn), pl.cdiv(HW, t_hw)),
            in_specs=[
                # (Bn, C, T_HW) pixel tile; ragged boundary blocks are masked.
                pl.BlockSpec((bn, C, t_hw), lambda n, p: (n, 0, p)),
                # weight resident in VMEM (constant index_map -> no re-DMA)
                pl.BlockSpec((1, C, 1), lambda n, p: (0, 0, 0)),
                # bias scalar in SMEM
                pl.BlockSpec(memory_space=pltpu.MemorySpace.SMEM),
            ],
            out_specs=pl.BlockSpec((bn, 1, t_hw), lambda n, p: (n, 0, p)),
        ),
        compiler_params=pltpu.CompilerParams(
            dimension_semantics=("parallel", "parallel"),
            vmem_limit_bytes=vmem_limit,
        ),
        cost_estimate=cost,
    )(x, w, b)

    return out.reshape(N, 1, H, W)


if __name__ == "__main__":
    key = jax.random.PRNGKey(0)
    keys = jax.random.split(key, 9)

    # --- Check 1: small shapes consistent with the module's forward ---------
    N, C, H, W = 2, 4, 16, 16
    x = jax.random.normal(keys[0], (N, C, H, W), dtype=jnp.float32)
    weight = jax.random.normal(keys[1], (1, C), dtype=jnp.float32) * 0.1
    bias = jax.random.normal(keys[2], (1,), dtype=jnp.float32) * 0.1

    out = jax.block_until_ready(salhead_forward(x, weight, bias))
    ref = jnp.einsum("nchw,oc->nohw", x, weight) + bias[0]
    assert out.shape == (N, 1, H, W)
    assert jnp.allclose(out, ref, atol=1e-5, rtol=1e-5)

    # --- Check 2: larger C, non-128-aligned HW (ragged, no padding pass) ----
    N2, C2, H2, W2 = 2, 160, 10, 10
    x2 = jax.random.normal(keys[3], (N2, C2, H2, W2), dtype=jnp.float32)
    weight2 = jax.random.normal(keys[4], (1, C2), dtype=jnp.float32) * 0.05
    bias2 = jax.random.normal(keys[5], (1,), dtype=jnp.float32) * 0.1

    out2 = jax.block_until_ready(salhead_forward(x2, weight2, bias2))
    ref2 = jnp.einsum("nchw,oc->nohw", x2, weight2) + bias2[0]
    assert out2.shape == (N2, 1, H2, W2)
    assert jnp.allclose(out2, ref2, atol=1e-4, rtol=1e-4)

    # --- Check 3: force the pixel-tiling path with a ragged last tile -------
    N3, C3, H3, W3 = 2, 8, 20, 20   # HW=400 -> tiles of 128, ragged last block
    x3 = jax.random.normal(keys[6], (N3, C3, H3, W3), dtype=jnp.float32)
    weight3 = jax.random.normal(keys[7], (1, C3), dtype=jnp.float32) * 0.1
    bias3 = jax.random.normal(keys[8], (1,), dtype=jnp.float32) * 0.1

    out3 = jax.block_until_ready(
        salhead_forward(x3, weight3, bias3, max_block_lanes=128))
    ref3 = jnp.einsum("nchw,oc->nohw", x3, weight3) + bias3[0]
    assert out3.shape == (N3, 1, H3, W3)
    assert jnp.allclose(out3, ref3, atol=1e-5, rtol=1e-5)

    print("KERNEL_OK")
</pallas_src>

<mosaic_0001>
module attributes {stable_mosaic.version = 11 : i64} {
  func.func @_salhead_kernel(%arg0: i32, %arg1: i32, %arg2: memref<1x4x256xf32, #tpu.memory_space<vmem>>, %arg3: memref<1x4x1xf32, #tpu.memory_space<vmem>>, %arg4: memref<1x1xf32, #tpu.memory_space<smem>>, %arg5: memref<1x1x256xf32, #tpu.memory_space<vmem>>) attributes {dimension_semantics = [#tpu.dimension_semantics<parallel>, #tpu.dimension_semantics<parallel>], iteration_bounds = array<i64: 2, 1>, scalar_prefetch = 0 : i64, scratch_operands = 0 : i64, tpu.core_type = #tpu.core_type<tc>, window_params = [{transform_indices = @transform_0, window_bounds = array<i64: 1, 4, 256>}, {pipeline_mode = #tpu.pipeline_mode<synchronous>, transform_indices = @transform_1, window_bounds = array<i64: 1, 4, 1>}, {transform_indices = @transform_2, window_bounds = array<i64: 1, 1>}, {transform_indices = @transform_3, window_bounds = array<i64: 1, 1, 256>}]} {
    %c0 = arith.constant 0 : index
    %c0_0 = arith.constant 0 : index
    %c0_1 = arith.constant 0 : index
    %0 = vector.load %arg2[%c0, %c0_0, %c0_1] : memref<1x4x256xf32, #tpu.memory_space<vmem>>, vector<1x4x256xf32>
    %c0_2 = arith.constant 0 : index
    %c0_3 = arith.constant 0 : index
    %c0_4 = arith.constant 0 : index
    %1 = vector.load %arg3[%c0_2, %c0_3, %c0_4] : memref<1x4x1xf32, #tpu.memory_space<vmem>>, vector<1x4x1xf32>
    %2 = vector.broadcast %1 : vector<1x4x1xf32> to vector<1x4x256xf32>
    %3 = arith.mulf %0, %2 : vector<1x4x256xf32>
    %cst = arith.constant dense<0.000000e+00> : vector<1x256xf32>
    %4 = vector.multi_reduction <add>, %3, %cst [1] : vector<1x4x256xf32> to vector<1x256xf32>
    %5 = vector.shape_cast %4 : vector<1x256xf32> to vector<1x1x256xf32>
    %c0_5 = arith.constant 0 : index
    %c0_6 = arith.constant 0 : index
    %6 = memref.load %arg4[%c0_5, %c0_6] : memref<1x1xf32, #tpu.memory_space<smem>>
    %7 = vector.broadcast %6 : f32 to vector<1x1x256xf32>
    %8 = arith.addf %5, %7 : vector<1x1x256xf32>
    %c0_7 = arith.constant 0 : index
    %c0_8 = arith.constant 0 : index
    %c0_9 = arith.constant 0 : index
    %9 = vector.load %arg5[%c0_7, %c0_8, %c0_9] : memref<1x1x256xf32, #tpu.memory_space<vmem>>, vector<1x1x256xf32>
    tpu.vector_store %arg5[%c0_7, %c0_8, %c0_9], %8 {strides = array<i32>} : memref<1x1x256xf32, #tpu.memory_space<vmem>>, vector<1x1x256xf32>,
    return
  }
  func.func @transform_0(%arg0: i32, %arg1: i32) -> (i32, i32, i32) {
    %c0_i32 = arith.constant 0 : i32
    %c0_i32_0 = arith.constant 0 : i32
    return %arg0, %c0_i32, %arg1 : i32, i32, i32
  }
  func.func @transform_1(%arg0: i32, %arg1: i32) -> (i32, i32, i32) {
    %c0_i32 = arith.constant 0 : i32
    %c0_i32_0 = arith.constant 0 : i32
    %c0_i32_1 = arith.constant 0 : i32
    %c0_i32_2 = arith.constant 0 : i32
    return %c0_i32, %c0_i32_0, %c0_i32_1 : i32, i32, i32
  }
  func.func @transform_2(%arg0: i32, %arg1: i32) -> (i32, i32) {
    %c0_i32 = arith.constant 0 : i32
    %c0_i32_0 = arith.constant 0 : i32
    %c0_i32_1 = arith.constant 0 : i32
    return %c0_i32, %c0_i32_0 : i32, i32
  }
  func.func @transform_3(%arg0: i32, %arg1: i32) -> (i32, i32, i32) {
    %c0_i32 = arith.constant 0 : i32
    %c0_i32_0 = arith.constant 0 : i32
    return %arg0, %c0_i32, %arg1 : i32, i32, i32
  }
}

</mosaic_0001>

<bundles_post_ra>
// kernel: tpu_custom_call.1
= control target key start
LH: loop header
LB: loop body
LE: loop exit
PB: predicated region body
PF: predicated region fallthrough
CT: control target
= control target key end

     0   :  { %s770_s0 = inlined_call_operand.hbm [shape: f32[2,4,256], index: 0, kind: input, shape index: {}]   ;;  %s771_s1 = inlined_call_operand.vmem [shape: f32[1,4,1], index: 1, kind: input, shape index: {}]   ;;  %s772_s2 = inlined_call_operand.<no memory space> [shape: f32[1,1], index: 2, kind: input, shape index: {}]   ;;  %s773_s3 = inlined_call_operand.hbm [shape: f32[2,1,256], index: 3, kind: output, shape index: {}]  }
   0x1   :  { %8 = sst [smem:[#allocation2]] %s772_s2 }
   0x2   :  { %9 = vsyncpa [#allocation4], 0 }
   0x3   :  { %11 = vsyncpa [#allocation4 + $0x1], 0 }
   0x4   :  { %12 = vsyncpa [#allocation5], 0 }
   0x5   :  { %14 = vsyncpa [#allocation5 + $0x1], 0  ;;  %s594_s14 = smov 0   ;;  %s596_s15 = smov 0  }
   0x6   :  { %s598_s16 = smov 0   ;;  %s600_s17 = smov 0  }
   0x7   :  { %s602_s18 = smov 0   ;;  %s604_s19 = smov 0  }
   0x8 LB: > { %s369_s2 = sadd.s32 4294967295, %s564_s19   ;;  %s370_s20 = sadd.s32 4294967294, %s564_s19   ;;  %s564_s19 = sphi %s604_s19, %s20_s19   ;;  %s560_s18 = sphi %s602_s18, %s789_s18   ;;  %s556_s17 = sphi %s600_s17, %s788_s17   ;;  %s552_s16 = sphi %s598_s16, %s787_s16   ;;  %s548_s15 = sphi %s596_s15, %s786_s15   ;;  %s544_s14 = sphi %s594_s14, %s785_s14  }
   0x9   : > { %s32_s21 = sadd.s32 1, %s560_s18  ;;  %s41_s22 = sadd.s32 1, %s552_s16 }
   0xa   : > { %p34_p0 = scmp.ge.s32.totalorder %s32_s21, 2  ;;  %p48_p1 = scmp.ne.s32.totalorder %s552_s16, %s548_s15 }
   0xb   : > { %p49_p2 = scmp.eq.s32.totalorder %s564_s19, 0  ;;  %p54_p3 = scmp.ne.s32.totalorder %s548_s15, %s544_s14 }
   0xc   : > { %s791_s21 = smov (%p34_p0, %s32_s21), 0  ;;  %p55_p5 = scmp.eq.s32.totalorder %s369_s2, 0 }
   0xd   : > { %p635_p4 = por %p49_p2, %p48_p1  ;;  %s36_s24 = ssub.s32 %s560_s18, %s791_s21 }
   0xe   : > { %p122_p6 = scmp.eq.s32.totalorder %s369_s2, 1  ;;  %p39_p7 = scmp.eq.s32.totalorder %s36_s24, 0 }
   0xf   : > { %p641_p8 = por %p55_p5, %p54_p3  ;;  %p128_p10 = scmp.eq.s32.totalorder %s370_s20, 1 }
  0x10   : > { %p645_p9 = por %p122_p6, %p48_p1  ;;  %p398_p13 = scmp.lt.s32.totalorder %s564_s19, 2 }
  0x11   : > { %s650_s27 = scalar_select %p39_p7, %s552_s16, %s41_s22  }
  0x12   : > { %s777_s26 = scalar_select %p645_p9, 1, 0 }
  0x13   : > { %p652_p11 = por %p128_p10, %p54_p3  ;;  %s154_s29 = sand.u32 1, %s552_s16  }
  0x14   : > { %s373_s30 = sshll.u32 %s154_s29, 3  ;;  %s384_s4 = sshll.u32 %s560_s18, 7 }
  0x15   : > { %s778_s28 = scalar_select %p652_p11, 1, 0 }
  0x16   : > { %s663_s7 = scalar_lea.hbm %s770_s0, %s384_s4  ;;  %s158_s8 = scalar_lea.vmem [#allocation3], %s373_s30 }
  0x17   : > { %s168_s9 = sshll.u32 %s158_s8, 4  ;;  %p669_p0 = pnand %p398_p13, %p635_p4  ;;  %s665_s9 = int_to_ptr.vmem [resolvable:$true] %s168_s9 }
  0x18   : > { %s155_s11 = scalar_lea.sflag [#allocation4], %s154_s29  ;;  %s452_s12 = scalar_lea.hbm %s663_s7, 128 }
  0x19   : > { %p453_p3 = scmp.ne.s32.totalorder %s663_s7, %s452_s12  ;;  %p454_p5 = pneg %p669_p0 }
  0x1a   : > { %s457_s20 = scalar_lea.hbm %s770_s0, 256  ;;  %p458_p4 = scmp.lt.u32.totalorder %s663_s7, %s770_s0 }
  0x1b   : > { %p455_p6 = pnand %p454_p5, %p453_p3  ;;  %p459_p10 = scmp.lt.u32.totalorder %s457_s20, %s452_s12 }
  0x1c   : > { %p461_p12 = scmp.lt.u32.totalorder %s452_s12, %s663_s7 }
  0x1d   : > { %p456_p7 = pneg %p455_p6  ;;  %p460_p13 = por %p459_p10, %p458_p4 }
  0x1f   : > { %p462_p1 = por %p461_p12, %p460_p13 }
  0x21   : > { %p463_p2 = pnand %p462_p1, %p456_p7 }
  0x23   : > { %466 = shalt.err (!%p463_p2)
}
  0x24   : > { %s467_s24 = scalar_lea.vmem %s665_s9, 128  ;;  %s566_s29 = smov [#allocation3]  }
  0x25   : > { %p468_p3 = scmp.ne.s32.totalorder %s665_s9, %s467_s24  ;;  %s472_s30 = sshll.u32 %s566_s29, 4  ;;  %s473_s30 = int_to_ptr.vmem [resolvable:$false] %s472_s30 }
  0x26   : > { %s474_s4 = scalar_lea.vmem %s473_s30, 256  ;;  %p475_p9 = scmp.lt.s32.totalorder %s665_s9, %s473_s30 }
  0x27   : > { %p470_p6 = pnand %p468_p3, %p454_p5  ;;  %p476_p4 = scmp.lt.s32.totalorder %s474_s4, %s467_s24 }
  0x29   : > { %p471_p11 = pneg %p470_p6  ;;  %p477_p10 = por %p476_p4, %p475_p9 }
  0x2b   : > { %p478_p12 = pnand %p477_p10, %p471_p11 }
  0x2d   : > { %481 = shalt.err (!%p478_p12)
}
  0x2e   : > { %393 = dma.hbm_to_vmem [thread:$0]  (!%p669_p0), %s663_s7, 128, %s665_s9, %s155_s11  }
  0x2f   : > { %p780_p1 = scmp.lt.s32.totalorder %s564_s19, 3  ;;  %p781_p2 = scmp.ge.s32.totalorder %s564_s19, 1 }
  0x31   : > { %p174_p5 = pnand %p781_p2, %p780_p1 }
  0x32   : > { %s705_s5 = sand.u32 (!%p174_p5), 1, %s548_s15  }
  0x33   : > { %177 = sbr.rel (%p174_p5) target bundleno = 230 (0xe6), region = 32  ;;  %s377_s6 = sshll.u32 (!%p174_p5), %s705_s5, 3 }
  0x34   : > { %s180_s8 = scalar_lea.sflag (!%p174_p5), [#allocation4], %s705_s5  ;;  %s183_s12 = scalar_lea.vmem (!%p174_p5), [#allocation3], %s377_s6 }
  0x3a   : > { %535 = dma.done.wait (%p641_p8), %s180_s8, 128  }
  0x3b   : > { %537 = vsyncadd (%p641_p8), %s180_s8, 4294967168  ;;  %v567_v0 = vmov 0   ;;  %v209_v1 = vld [vmem:[%s771_s1] sm:$0xf]  ;;  %v568_v2 = vmov 839922192   ;;  %v217_v4 = vlaneseq }
  0x3c   : > { %451 = vset.pattern.permute.xlu0 %v567_v0  ;;  %v215_v3 = vunpack.c.l.s4 %v568_v2  ;;  %v208_v9 = vld [vmem:[%s183_s12] sm:$0xff]  ;;  %vm226_vm0 = vcmask 1043456   ;;  %s241_s25 = sld [smem:[#allocation2]]  ;;  %v569_v20 = vmov 1966171168   ;;  %s378_s10 = sshll.u32 %s705_s5, 1 }
  0x3d   : > { %212 = vperm.xlu0 %451, %v209_v1   ;;  %v218_v6 = vshrl.u32 %v217_v4, 7  ;;  %v249_v21 = vunpack.c.l.s4 %v569_v20  ;;  %s385_s11 = sshll.u32 %s556_s17, 5  ;;  %s205_s13 = scalar_lea.vmem [#allocation6], %s378_s10  ;;  %vm265_vm1 = vcmp.lt.s32.totalorder %v217_v4, 256 }
  0x3e   : > { %v216_v5 = vunpack.c.0.s8 %v215_v3  ;;  %s285_s2 = sshll.u32 %s205_s13, 4  ;;  %s721_s23 = scalar_lea.hbm %s773_s3, %s385_s11  ;;  %s723_s2 = int_to_ptr.vmem [resolvable:$true] %s285_s2 }
  0x3f   : > { %v250_v26 = vunpack.c.0.s8 %v249_v21  ;;  %s269_s24 = scalar_lea.sflag [#allocation5], %s705_s5  ;;  %s482_s29 = scalar_lea.vmem %s723_s2, 32 }
  0x40   : > { %v219_v7 = vsub.s32 %v216_v5, %v218_v6  ;;  %p483_p8 = scmp.ne.s32.totalorder %s723_s2, %s482_s29  ;;  %p782_p9 = scmp.ne.s32.totalorder %s777_s26, 0 }
  0x41   : > { %v253_v31 = vsub.s32 %v250_v26, %v218_v6  ;;  %s570_s17 = smov [#allocation6]  }
  0x42   : > { %v242_v29 = vstv %s241_s25  ;;  %p484_p11 = pnand %p483_p8, %p782_p9  ;;  %s486_s30 = sshll.u32 %s570_s17, 4  ;;  %s487_s30 = int_to_ptr.vmem [resolvable:$false] %s486_s30 }
  0x43   : > { %s488_s4 = scalar_lea.vmem %s487_s30, 64  ;;  %p489_p7 = scmp.lt.s32.totalorder %s723_s2, %s487_s30 }
  0x44   : > { %p485_p0 = pneg %p484_p11  ;;  %p490_p13 = scmp.lt.s32.totalorder %s488_s4, %s482_s29 }
  0x46   : > { %p491_p3 = por %p490_p13, %p489_p7 }
  0x48   : > { %p492_p6 = pnand %p491_p3, %p485_p0 }
  0xbc   : > { %v213_v8 = vpop.permute.xlu0 %212 }
  0xbd   : > { %v220_v10 = vrot.slane %v213_v8, %v219_v7 }
  0xbf   : > { %v222_v11 = vmul.f32 %v220_v10, %v208_v9 }
  0xc1   : > { %v224_v12 = vcombine.high %v222_v11, %v222_v11  ;;  %v227_v13 = vsel %vm226_vm0, %v222_v11, 0.0 }
  0xc2   : > { %v228_v14 = vrot.slane %v227_v13, 4 }
  0xc3   : > { %v234_v15 = vsel %vm226_vm0, %v224_v12, 0.0 }
  0xc4   : > { %v229_v16 = vadd.f32 %v228_v14, %v227_v13  ;;  %v235_v17 = vrot.slane %v234_v15, 4 }
  0xc6   : > { %v230_v18 = vrot.slane %v229_v16, 2  ;;  %v236_v19 = vadd.f32 %v235_v17, %v234_v15 }
  0xc8   : > { %v231_v22 = vadd.f32 %v230_v18, %v229_v16  ;;  %v237_v23 = vrot.slane %v236_v19, 2 }
  0xca   : > { %v232_v24 = vrot.slane %v231_v22, 1  ;;  %v238_v25 = vadd.f32 %v237_v23, %v236_v19 }
  0xcc   : > { %v233_v27 = vadd.f32 %v232_v24, %v231_v22  ;;  %v239_v28 = vrot.slane %v238_v25, 1 }
  0xce   : > { %v240_v30 = vadd.f32 %v239_v28, %v238_v25  ;;  %v243_v32 = vadd.f32 %v242_v29, %v233_v27 }
  0xd0   : > { %v244_v33 = vadd.f32 %v242_v29, %v240_v30 }
  0xd2   : > { %v247_v34 = vcombine.low %v243_v32, %v244_v33 }
  0xd4   : > { %v254_v35 = vrot.slane %v247_v34, %v253_v31 }
  0xd6   : > { %v261_v36 = vrot.slane %v254_v35, %v253_v31 }
  0xd8   : > { %267 = vst.msk [vmem:[%s205_s13] sm:$0x3] %vm265_vm1, %v261_v36 }
  0xd9   : > { %495 = shalt.err (!%p492_p6)
}
  0xda   : > { %s496_s5 = scalar_lea.hbm %s721_s23, 32  ;;  %s500_s12 = scalar_lea.hbm %s773_s3, 64 }
  0xdb   : > { %p497_p4 = scmp.ne.s32.totalorder %s721_s23, %s496_s5  ;;  %p501_p1 = scmp.lt.u32.totalorder %s721_s23, %s773_s3 }
  0xdc   : > { %p502_p2 = scmp.lt.u32.totalorder %s500_s12, %s496_s5  ;;  %p504_p8 = scmp.lt.u32.totalorder %s496_s5, %s721_s23 }
  0xdd   : > { %p498_p10 = pnand %p497_p4, %p782_p9 }
  0xde   : > { %p503_p5 = por %p502_p2, %p501_p1 }
  0xdf   : > { %p499_p12 = pneg %p498_p10 }
  0xe0   : > { %p505_p11 = por %p504_p8, %p503_p5 }
  0xe2   : > { %p506_p0 = pnand %p505_p11, %p499_p12 }
  0xe4   : > { %509 = shalt.err (!%p506_p0)
}
  0xe5   : > { %388 = dma.vmem_to_hbm [thread:$0]  (%p782_p9), %s723_s2, 32, %s721_s23, %s269_s24  }
  0xe6 PF: > { %s297_s25 = sand.u32 1, %s544_s14   ;;  %p783_p7 = scmp.ne.s32.totalorder %s778_s28, 0 }
  0xe7   : > { %p784_p13 = scmp.ge.s32.totalorder %s564_s19, 2  ;;  %s298_s10 = scalar_lea.sflag [#allocation5], %s297_s25 }
  0xe9   : > { %p395_p3 = pnand %p784_p13, %p783_p7 }
  0xeb   : > { %539 = dma.done.wait (!%p395_p3), %s298_s10, 32  }
  0xec   : > { %541 = vsyncadd (!%p395_p3), %s298_s10, 4294967264  ;;  %s20_s19 = sadd.s32 1, %s564_s19   ;;  %s785_s14 = smov %s548_s15 }
  0xed   : > { %p17_p6 = scmp.ge.s32.totalorder %s20_s19, 4   ;;  %s786_s15 = smov %s552_s16 }
  0xee   : > { %s787_s16 = smov %s650_s27  ;;  %s788_s17 = smov %s560_s18 }
  0xef   : > { %s789_s18 = smov %s791_s21  ;;  %19 = sbr.rel (!%p17_p6) target bundleno = 8 (0x8), region = 77 }
  0xf6   :  { %303 = vsyncpa [#allocation4], 1 }
  0xf7   :  { %305 = vsyncpa [#allocation4 + $0x1], 1 }
  0xf8   :  { %306 = vsyncpa [#allocation5], 1 }
  0xf9   :  { %308 = vsyncpa [#allocation5 + $0x1], 1 }

</bundles_post_ra>
